<compile_context>
chip_gen: v5e
topology: v5e:2x2
jax: 0.10.0
libtpu: 0.0.40
codegen_flags: <defaults>
</compile_context>

<pallas_src>
import functools

import jax
import jax.numpy as jnp
from jax.experimental import pallas as pl
from jax.experimental.pallas import tpu as pltpu

ALPHA = 0.01   # LeakyReLU negative slope (module default alpha=0.01)
BN_EPS = 1e-5  # nn.BatchNorm1d default eps


def _round_up(n, m):
    return (n + m - 1) // m * m


def _bn_layer(h, w, gamma, beta):
    """Linear (bias cancelled) -> BatchNorm1d (batch stats) -> LeakyReLU."""
    y = jnp.dot(h, w, preferred_element_type=jnp.float32)
    inv_n = jnp.float32(1.0 / y.shape[0])
    # One-pass statistics, single sweep over the batch axis.
    mu = jnp.sum(y, axis=0, keepdims=True) * inv_n
    msq = jnp.sum(y * y, axis=0, keepdims=True) * inv_n
    var = jnp.maximum(msq - mu * mu, 0.0)       # clamp: avoid tiny negative var
    y = (y - mu) * jax.lax.rsqrt(var + BN_EPS) * gamma + beta
    return jnp.where(y > 0, y, ALPHA * y)       # LeakyReLU


def qnetwork_kernel(x_ref, slab_ref, out_ref, *, action_size):
    batch, state_size = x_ref.shape
    width = slab_ref.shape[1]                   # lane width (>= 128, mult of 128)
    s8 = _round_up(state_size, 8)

    # Static, 8-row-aligned, full-width row slices of the parameter slab.
    w1 = slab_ref[0:state_size, :]                       # (state_size, W)
    w2 = slab_ref[s8:s8 + width, :]                      # (W, W)
    w3 = slab_ref[s8 + width:s8 + 2 * width, :]          # (W, W)
    w4 = slab_ref[s8 + 2 * width:s8 + 3 * width, :]      # (W, W)
    v0 = s8 + 3 * width
    vec = slab_ref[v0:v0 + 8, :]                         # (8, W): g1,be1,g2,be2,g3,be3,b4,0
    g1, be1 = vec[0:1, :], vec[1:2, :]
    g2, be2 = vec[2:3, :], vec[3:4, :]
    g3, be3 = vec[4:5, :], vec[5:6, :]
    b4 = vec[6:7, :]

    h = _bn_layer(x_ref[...], w1, g1, be1)
    h = _bn_layer(h, w2, g2, be2)
    h = _bn_layer(h, w3, g3, be3)

    # Final linear; padded lanes (>= action_size) are exactly 0.
    q = jnp.dot(h, w4, preferred_element_type=jnp.float32) + b4   # (batch, W)

    # In-kernel max / first-max index over the valid action lanes.
    lane = jax.lax.broadcasted_iota(jnp.int32, (batch, width), 1)
    q_m = jnp.where(lane < action_size, q, -jnp.inf)
    qmax = jnp.max(q_m, axis=1, keepdims=True)                    # (batch, 1)
    lane_f = lane.astype(jnp.float32)
    idx = jnp.min(jnp.where(q_m == qmax, lane_f, jnp.float32(width)),
                  axis=1, keepdims=True)                          # first max, as float

    # Lane-dense (batch, W) output: q | qmax | idx | zeros.  One unmasked store.
    out = jnp.where(lane == action_size, qmax, q)
    out = jnp.where(lane == action_size + 1, idx, out)
    out_ref[...] = out


def make_params(key, state_size, hidden_ip, hidden_rest, action_size):
    """Deterministic synthetic parameters (shapes follow the PyTorch module).

    Linear weights are pre-transposed to (in_features, out_features).
    b1/b2/b3 are deliberately NON-zero so the asserts prove they cancel under
    training-mode BatchNorm (the kernel never sees them).
    """
    ks = jax.random.split(key, 8)
    scale = 0.1

    def lin(k, fan_in, fan_out):
        kw, kb = jax.random.split(k)
        w = scale * jax.random.normal(kw, (fan_in, fan_out), jnp.float32)
        b = scale * jax.random.normal(kb, (1, fan_out), jnp.float32)
        return w, b

    w1, b1 = lin(ks[0], state_size, hidden_ip)
    w2, b2 = lin(ks[1], hidden_ip, hidden_rest)
    w3, b3 = lin(ks[2], hidden_rest, hidden_rest)
    w4, b4 = lin(ks[3], hidden_rest, action_size)

    def bn(k, n):
        g = 1.0 + 0.05 * jax.random.normal(k, (1, n), jnp.float32)
        be = 0.05 * jax.random.normal(jax.random.fold_in(k, 1), (1, n), jnp.float32)
        return g, be

    g1, be1 = bn(ks[4], hidden_ip)
    g2, be2 = bn(ks[5], hidden_rest)
    g3, be3 = bn(ks[6], hidden_rest)

    return (w1, b1, g1, be1, w2, b2, g2, be2, w3, b3, g3, be3, w4, b4)


def prepare_params(params):
    """One-time packing of all parameters into a single (rows, W) f32 slab.

    Done OUTSIDE the per-call forward path (hoisted per the perf review).
    b1/b2/b3 are dropped: they cancel exactly under training-mode BatchNorm.
    """
    (w1, b1, g1, be1, w2, b2, g2, be2, w3, b3, g3, be3, w4, b4) = params
    del b1, b2, b3

    state_size, hidden_ip = w1.shape
    hidden_rest = w2.shape[1]
    action_size = w4.shape[1]
    width = _round_up(max(hidden_ip, hidden_rest, action_size + 2), 128)
    s8 = _round_up(state_size, 8)

    def pad_mat(w, rows):
        w = w.astype(jnp.float32)
        return jnp.pad(w, ((0, rows - w.shape[0]), (0, width - w.shape[1])))

    def pad_row(v):
        v = v.reshape(1, -1).astype(jnp.float32)
        return jnp.pad(v, ((0, 0), (0, width - v.shape[1])))

    slab = jnp.concatenate([
        pad_mat(w1, s8),            # rows [0, s8)
        pad_mat(w2, width),         # rows [s8, s8 + W)
        pad_mat(w3, width),         # rows [s8 + W, s8 + 2W)
        pad_mat(w4, width),         # rows [s8 + 2W, s8 + 3W)
        pad_row(g1), pad_row(be1),  # rows [s8 + 3W, s8 + 3W + 8)
        pad_row(g2), pad_row(be2),
        pad_row(g3), pad_row(be3),
        pad_row(b4),
        jnp.zeros((1, width), jnp.float32),
    ], axis=0)
    return slab, action_size


@functools.partial(jax.jit, static_argnames=("action_size",))
def qnetwork_forward(x, slab, *, action_size):
    batch = x.shape[0]
    width = slab.shape[1]

    vmem = pl.BlockSpec(memory_space=pltpu.MemorySpace.VMEM)
    out = pl.pallas_call(
        functools.partial(qnetwork_kernel, action_size=action_size),
        out_shape=jax.ShapeDtypeStruct((batch, width), jnp.float32),
        in_specs=[vmem, vmem],
        out_specs=vmem,
    )(x, slab)

    q = out[:, :action_size]
    qmax = out[:, action_size]
    act = out[:, action_size + 1].astype(jnp.int32)
    return q, act, qmax


def reference_forward(x, params):
    """Pure-JAX reference mirroring the PyTorch forward (training-mode BN,
    biases included)."""
    (w1, b1, g1, be1, w2, b2, g2, be2, w3, b3, g3, be3, w4, b4) = params

    def layer(h, w, b, g, be):
        y = h @ w + b
        mu = y.mean(axis=0, keepdims=True)
        var = ((y - mu) ** 2).mean(axis=0, keepdims=True)  # biased var
        y = (y - mu) / jnp.sqrt(var + BN_EPS) * g + be
        return jnp.where(y > 0, y, ALPHA * y)

    h = layer(x, w1, b1, g1, be1)
    h = layer(h, w2, b2, g2, be2)
    h = layer(h, w3, b3, g3, be3)
    q = h @ w4 + b4
    return q, jnp.argmax(q, axis=1), jnp.max(q, axis=1)


if __name__ == "__main__":
    # Small shapes consistent with the module's MLP structure.  Batch is a
    # multiple of 8 (f32 sublane tile) and >1 as training-mode BN requires.
    BATCH = 64
    STATE_SIZE = 16      # params.CAR_NUM_STATES_ATT (synthetic)
    HIDDEN_IP = 32       # hidden_size_IP
    HIDDEN_REST = 32     # hidden_size_rest
    ACTION_SIZE = 8      # params.CAR_NUM_ACTIONS (synthetic)

    key = jax.random.PRNGKey(0)
    k_x, k_p = jax.random.split(key)
    x = jax.random.normal(k_x, (BATCH, STATE_SIZE), jnp.float32)
    params = make_params(k_p, STATE_SIZE, HIDDEN_IP, HIDDEN_REST, ACTION_SIZE)

    # One-time parameter packing (outside the per-step path).
    slab, action_size = prepare_params(params)
    slab = jax.block_until_ready(slab)

    q, act, qmax = qnetwork_forward(x, slab, action_size=action_size)
    jax.block_until_ready((q, act, qmax))

    q_ref, act_ref, qmax_ref = reference_forward(x, params)
    assert q.shape == (BATCH, ACTION_SIZE)
    assert act.shape == (BATCH,) and qmax.shape == (BATCH,)
    assert jnp.allclose(q, q_ref, atol=1e-4, rtol=1e-4)
    assert jnp.array_equal(act.astype(jnp.int32), act_ref.astype(jnp.int32))
    assert jnp.allclose(qmax, qmax_ref, atol=1e-4, rtol=1e-4)

    print("KERNEL_OK")
</pallas_src>

<mosaic_0001>
module attributes {stable_mosaic.version = 11 : i64} {
  func.func @qnetwork_kernel(%arg0: memref<64x16xf32, #tpu.memory_space<vmem>>, %arg1: memref<408x128xf32, #tpu.memory_space<vmem>>, %arg2: memref<64x128xf32, #tpu.memory_space<vmem>>) attributes {dimension_semantics = [], scalar_prefetch = 0 : i64, scratch_operands = 0 : i64, tpu.core_type = #tpu.core_type<tc>} {
    %c0 = arith.constant 0 : index
    %c0_0 = arith.constant 0 : index
    %0 = vector.load %arg1[%c0, %c0_0] : memref<408x128xf32, #tpu.memory_space<vmem>>, vector<16x128xf32>
    %c16 = arith.constant 16 : index
    %c0_1 = arith.constant 0 : index
    %1 = vector.load %arg1[%c16, %c0_1] : memref<408x128xf32, #tpu.memory_space<vmem>>, vector<128x128xf32>
    %c144 = arith.constant 144 : index
    %c0_2 = arith.constant 0 : index
    %2 = vector.load %arg1[%c144, %c0_2] : memref<408x128xf32, #tpu.memory_space<vmem>>, vector<128x128xf32>
    %c272 = arith.constant 272 : index
    %c0_3 = arith.constant 0 : index
    %3 = vector.load %arg1[%c272, %c0_3] : memref<408x128xf32, #tpu.memory_space<vmem>>, vector<128x128xf32>
    %c400 = arith.constant 400 : index
    %c0_4 = arith.constant 0 : index
    %4 = vector.load %arg1[%c400, %c0_4] : memref<408x128xf32, #tpu.memory_space<vmem>>, vector<8x128xf32>
    %5 = vector.extract_strided_slice %4 {offsets = [0, 0], sizes = [1, 128], strides = [1, 1]} : vector<8x128xf32> to vector<1x128xf32>
    %6 = vector.extract_strided_slice %4 {offsets = [1, 0], sizes = [1, 128], strides = [1, 1]} : vector<8x128xf32> to vector<1x128xf32>
    %7 = vector.extract_strided_slice %4 {offsets = [2, 0], sizes = [1, 128], strides = [1, 1]} : vector<8x128xf32> to vector<1x128xf32>
    %8 = vector.extract_strided_slice %4 {offsets = [3, 0], sizes = [1, 128], strides = [1, 1]} : vector<8x128xf32> to vector<1x128xf32>
    %9 = vector.extract_strided_slice %4 {offsets = [4, 0], sizes = [1, 128], strides = [1, 1]} : vector<8x128xf32> to vector<1x128xf32>
    %10 = vector.extract_strided_slice %4 {offsets = [5, 0], sizes = [1, 128], strides = [1, 1]} : vector<8x128xf32> to vector<1x128xf32>
    %11 = vector.extract_strided_slice %4 {offsets = [6, 0], sizes = [1, 128], strides = [1, 1]} : vector<8x128xf32> to vector<1x128xf32>
    %c0_5 = arith.constant 0 : index
    %c0_6 = arith.constant 0 : index
    %12 = vector.load %arg0[%c0_5, %c0_6] : memref<64x16xf32, #tpu.memory_space<vmem>>, vector<64x16xf32>
    %cst = arith.constant dense<0.000000e+00> : vector<64x128xf32>
    %13 = tpu.matmul %12, %0, %cst {dimension_numbers = #tpu.dot_dimension_numbers<[1], [0], [0], [1], [0, 0, 1, 1], [], []>} : vector<64x16xf32>, vector<16x128xf32>, vector<64x128xf32> -> vector<64x128xf32>
    %cst_7 = arith.constant dense<0.000000e+00> : vector<128xf32>
    %14 = vector.multi_reduction <add>, %13, %cst_7 [0] : vector<64x128xf32> to vector<128xf32>
    %15 = vector.shape_cast %14 : vector<128xf32> to vector<1x128xf32>
    %cst_8 = arith.constant 1.562500e-02 : f32
    %16 = vector.broadcast %cst_8 : f32 to vector<1x128xf32>
    %17 = arith.mulf %15, %16 : vector<1x128xf32>
    %18 = arith.mulf %13, %13 : vector<64x128xf32>
    %cst_9 = arith.constant dense<0.000000e+00> : vector<128xf32>
    %19 = vector.multi_reduction <add>, %18, %cst_9 [0] : vector<64x128xf32> to vector<128xf32>
    %20 = vector.shape_cast %19 : vector<128xf32> to vector<1x128xf32>
    %cst_10 = arith.constant 1.562500e-02 : f32
    %21 = vector.broadcast %cst_10 : f32 to vector<1x128xf32>
    %22 = arith.mulf %20, %21 : vector<1x128xf32>
    %23 = arith.mulf %17, %17 : vector<1x128xf32>
    %24 = arith.subf %22, %23 : vector<1x128xf32>
    %cst_11 = arith.constant 0.000000e+00 : f32
    %25 = vector.broadcast %cst_11 : f32 to vector<1x128xf32>
    %26 = arith.maximumf %24, %25 : vector<1x128xf32>
    %27 = vector.broadcast %17 : vector<1x128xf32> to vector<64x128xf32>
    %28 = arith.subf %13, %27 : vector<64x128xf32>
    %cst_12 = arith.constant 9.99999974E-6 : f32
    %29 = vector.broadcast %cst_12 : f32 to vector<1x128xf32>
    %30 = arith.addf %26, %29 : vector<1x128xf32>
    %31 = math.rsqrt %30 : vector<1x128xf32>
    %32 = vector.broadcast %31 : vector<1x128xf32> to vector<64x128xf32>
    %33 = arith.mulf %28, %32 : vector<64x128xf32>
    %34 = vector.broadcast %5 : vector<1x128xf32> to vector<64x128xf32>
    %35 = arith.mulf %33, %34 : vector<64x128xf32>
    %36 = vector.broadcast %6 : vector<1x128xf32> to vector<64x128xf32>
    %37 = arith.addf %35, %36 : vector<64x128xf32>
    %cst_13 = arith.constant 0.000000e+00 : f32
    %38 = vector.broadcast %cst_13 : f32 to vector<64x128xf32>
    %39 = arith.cmpf ogt, %37, %38 : vector<64x128xf32>
    %cst_14 = arith.constant 0.00999999977 : f32
    %40 = vector.broadcast %cst_14 : f32 to vector<64x128xf32>
    %41 = arith.mulf %40, %37 : vector<64x128xf32>
    %42 = arith.select %39, %37, %41 : vector<64x128xi1>, vector<64x128xf32>
    %cst_15 = arith.constant dense<0.000000e+00> : vector<64x128xf32>
    %43 = tpu.matmul %42, %1, %cst_15 {dimension_numbers = #tpu.dot_dimension_numbers<[1], [0], [0], [1], [0, 0, 1, 1], [], []>} : vector<64x128xf32>, vector<128x128xf32>, vector<64x128xf32> -> vector<64x128xf32>
    %cst_16 = arith.constant dense<0.000000e+00> : vector<128xf32>
    %44 = vector.multi_reduction <add>, %43, %cst_16 [0] : vector<64x128xf32> to vector<128xf32>
    %45 = vector.shape_cast %44 : vector<128xf32> to vector<1x128xf32>
    %cst_17 = arith.constant 1.562500e-02 : f32
    %46 = vector.broadcast %cst_17 : f32 to vector<1x128xf32>
    %47 = arith.mulf %45, %46 : vector<1x128xf32>
    %48 = arith.mulf %43, %43 : vector<64x128xf32>
    %cst_18 = arith.constant dense<0.000000e+00> : vector<128xf32>
    %49 = vector.multi_reduction <add>, %48, %cst_18 [0] : vector<64x128xf32> to vector<128xf32>
    %50 = vector.shape_cast %49 : vector<128xf32> to vector<1x128xf32>
    %cst_19 = arith.constant 1.562500e-02 : f32
    %51 = vector.broadcast %cst_19 : f32 to vector<1x128xf32>
    %52 = arith.mulf %50, %51 : vector<1x128xf32>
    %53 = arith.mulf %47, %47 : vector<1x128xf32>
    %54 = arith.subf %52, %53 : vector<1x128xf32>
    %cst_20 = arith.constant 0.000000e+00 : f32
    %55 = vector.broadcast %cst_20 : f32 to vector<1x128xf32>
    %56 = arith.maximumf %54, %55 : vector<1x128xf32>
    %57 = vector.broadcast %47 : vector<1x128xf32> to vector<64x128xf32>
    %58 = arith.subf %43, %57 : vector<64x128xf32>
    %cst_21 = arith.constant 9.99999974E-6 : f32
    %59 = vector.broadcast %cst_21 : f32 to vector<1x128xf32>
    %60 = arith.addf %56, %59 : vector<1x128xf32>
    %61 = math.rsqrt %60 : vector<1x128xf32>
    %62 = vector.broadcast %61 : vector<1x128xf32> to vector<64x128xf32>
    %63 = arith.mulf %58, %62 : vector<64x128xf32>
    %64 = vector.broadcast %7 : vector<1x128xf32> to vector<64x128xf32>
    %65 = arith.mulf %63, %64 : vector<64x128xf32>
    %66 = vector.broadcast %8 : vector<1x128xf32> to vector<64x128xf32>
    %67 = arith.addf %65, %66 : vector<64x128xf32>
    %cst_22 = arith.constant 0.000000e+00 : f32
    %68 = vector.broadcast %cst_22 : f32 to vector<64x128xf32>
    %69 = arith.cmpf ogt, %67, %68 : vector<64x128xf32>
    %cst_23 = arith.constant 0.00999999977 : f32
    %70 = vector.broadcast %cst_23 : f32 to vector<64x128xf32>
    %71 = arith.mulf %70, %67 : vector<64x128xf32>
    %72 = arith.select %69, %67, %71 : vector<64x128xi1>, vector<64x128xf32>
    %cst_24 = arith.constant dense<0.000000e+00> : vector<64x128xf32>
    %73 = tpu.matmul %72, %2, %cst_24 {dimension_numbers = #tpu.dot_dimension_numbers<[1], [0], [0], [1], [0, 0, 1, 1], [], []>} : vector<64x128xf32>, vector<128x128xf32>, vector<64x128xf32> -> vector<64x128xf32>
    %cst_25 = arith.constant dense<0.000000e+00> : vector<128xf32>
    %74 = vector.multi_reduction <add>, %73, %cst_25 [0] : vector<64x128xf32> to vector<128xf32>
    %75 = vector.shape_cast %74 : vector<128xf32> to vector<1x128xf32>
    %cst_26 = arith.constant 1.562500e-02 : f32
    %76 = vector.broadcast %cst_26 : f32 to vector<1x128xf32>
    %77 = arith.mulf %75, %76 : vector<1x128xf32>
    %78 = arith.mulf %73, %73 : vector<64x128xf32>
    %cst_27 = arith.constant dense<0.000000e+00> : vector<128xf32>
    %79 = vector.multi_reduction <add>, %78, %cst_27 [0] : vector<64x128xf32> to vector<128xf32>
    %80 = vector.shape_cast %79 : vector<128xf32> to vector<1x128xf32>
    %cst_28 = arith.constant 1.562500e-02 : f32
    %81 = vector.broadcast %cst_28 : f32 to vector<1x128xf32>
    %82 = arith.mulf %80, %81 : vector<1x128xf32>
    %83 = arith.mulf %77, %77 : vector<1x128xf32>
    %84 = arith.subf %82, %83 : vector<1x128xf32>
    %cst_29 = arith.constant 0.000000e+00 : f32
    %85 = vector.broadcast %cst_29 : f32 to vector<1x128xf32>
    %86 = arith.maximumf %84, %85 : vector<1x128xf32>
    %87 = vector.broadcast %77 : vector<1x128xf32> to vector<64x128xf32>
    %88 = arith.subf %73, %87 : vector<64x128xf32>
    %cst_30 = arith.constant 9.99999974E-6 : f32
    %89 = vector.broadcast %cst_30 : f32 to vector<1x128xf32>
    %90 = arith.addf %86, %89 : vector<1x128xf32>
    %91 = math.rsqrt %90 : vector<1x128xf32>
    %92 = vector.broadcast %91 : vector<1x128xf32> to vector<64x128xf32>
    %93 = arith.mulf %88, %92 : vector<64x128xf32>
    %94 = vector.broadcast %9 : vector<1x128xf32> to vector<64x128xf32>
    %95 = arith.mulf %93, %94 : vector<64x128xf32>
    %96 = vector.broadcast %10 : vector<1x128xf32> to vector<64x128xf32>
    %97 = arith.addf %95, %96 : vector<64x128xf32>
    %cst_31 = arith.constant 0.000000e+00 : f32
    %98 = vector.broadcast %cst_31 : f32 to vector<64x128xf32>
    %99 = arith.cmpf ogt, %97, %98 : vector<64x128xf32>
    %cst_32 = arith.constant 0.00999999977 : f32
    %100 = vector.broadcast %cst_32 : f32 to vector<64x128xf32>
    %101 = arith.mulf %100, %97 : vector<64x128xf32>
    %102 = arith.select %99, %97, %101 : vector<64x128xi1>, vector<64x128xf32>
    %cst_33 = arith.constant dense<0.000000e+00> : vector<64x128xf32>
    %103 = tpu.matmul %102, %3, %cst_33 {dimension_numbers = #tpu.dot_dimension_numbers<[1], [0], [0], [1], [0, 0, 1, 1], [], []>} : vector<64x128xf32>, vector<128x128xf32>, vector<64x128xf32> -> vector<64x128xf32>
    %104 = vector.broadcast %11 : vector<1x128xf32> to vector<64x128xf32>
    %105 = arith.addf %103, %104 : vector<64x128xf32>
    %106 = tpu.iota {dimensions = array<i32: 1>} : vector<64x128xi32>
    %c8_i32 = arith.constant 8 : i32
    %107 = vector.broadcast %c8_i32 : i32 to vector<64x128xi32>
    %108 = arith.cmpi slt, %106, %107 : vector<64x128xi32>
    %cst_34 = arith.constant 0xFF800000 : f32
    %109 = vector.broadcast %cst_34 : f32 to vector<64x128xf32>
    %110 = arith.select %108, %105, %109 : vector<64x128xi1>, vector<64x128xf32>
    %cst_35 = arith.constant dense<0xFF800000> : vector<64xf32>
    %111 = vector.multi_reduction <maximumf>, %110, %cst_35 [1] : vector<64x128xf32> to vector<64xf32>
    %112 = vector.shape_cast %111 : vector<64xf32> to vector<64x1xf32>
    %113 = arith.sitofp %106 : vector<64x128xi32> to vector<64x128xf32>
    %114 = vector.broadcast %112 : vector<64x1xf32> to vector<64x128xf32>
    %115 = arith.cmpf oeq, %110, %114 : vector<64x128xf32>
    %cst_36 = arith.constant 1.280000e+02 : f32
    %116 = vector.broadcast %cst_36 : f32 to vector<64x128xf32>
    %117 = arith.select %115, %113, %116 : vector<64x128xi1>, vector<64x128xf32>
    %cst_37 = arith.constant dense<0x7F800000> : vector<64xf32>
    %118 = vector.multi_reduction <minimumf>, %117, %cst_37 [1] : vector<64x128xf32> to vector<64xf32>
    %119 = vector.shape_cast %118 : vector<64xf32> to vector<64x1xf32>
    %c8_i32_38 = arith.constant 8 : i32
    %120 = vector.broadcast %c8_i32_38 : i32 to vector<64x128xi32>
    %121 = arith.cmpi eq, %106, %120 : vector<64x128xi32>
    %122 = vector.shape_cast %112 : vector<64x1xf32> to vector<64x1xf32>
    %123 = vector.broadcast %122 : vector<64x1xf32> to vector<64x128xf32>
    %124 = arith.select %121, %123, %105 : vector<64x128xi1>, vector<64x128xf32>
    %c9_i32 = arith.constant 9 : i32
    %125 = vector.broadcast %c9_i32 : i32 to vector<64x128xi32>
    %126 = arith.cmpi eq, %106, %125 : vector<64x128xi32>
    %127 = vector.shape_cast %119 : vector<64x1xf32> to vector<64x1xf32>
    %128 = vector.broadcast %127 : vector<64x1xf32> to vector<64x128xf32>
    %129 = arith.select %126, %128, %124 : vector<64x128xi1>, vector<64x128xf32>
    %c0_39 = arith.constant 0 : index
    %c0_40 = arith.constant 0 : index
    %130 = vector.load %arg2[%c0_39, %c0_40] : memref<64x128xf32, #tpu.memory_space<vmem>>, vector<64x128xf32>
    tpu.vector_store %arg2[%c0_39, %c0_40], %129 {strides = array<i32>} : memref<64x128xf32, #tpu.memory_space<vmem>>, vector<64x128xf32>,
    return
  }
}

</mosaic_0001>

<bundles_post_ra>
// kernel: qnetwork_forward.1
= control target key start
LH: loop header
LB: loop body
LE: loop exit
PB: predicated region body
PF: predicated region fallthrough
CT: control target
= control target key end

     0   :  { %7 = vsyncpa [#allocation3], 0  ;;  %s734_s12 = smov [#allocation2]   ;;  %s735_s14 = smov 128   ;;  %s1095_s0 = inlined_call_operand.vmem [shape: f32[64,16], index: 0, kind: input, shape index: {}]   ;;  %s1096_s1 = inlined_call_operand.hbm [shape: f32[408,128], index: 1, kind: input, shape index: {}]   ;;  %s1097_s2 = inlined_call_operand.vmem [shape: f32[64,128], index: 2, kind: output, shape index: {}]  }
   0x1   :  { %s14_s11 = sshll.u32 %s1096_s1, 4  ;;  %s16_s13 = sshll.u32 %s734_s12, 4  ;;  %s15_s11 = int_to_ptr.hbm [resolvable:$true] %s14_s11  ;;  %s17_s13 = int_to_ptr.vmem [resolvable:$true] %s16_s13 }
   0x2   :  { %s736_s15 = smov 8  }
   0x3   :  { %22 = dma.hbm_to_vmem [thread:$0]  %s15_s11, 6528, %s17_s13, [#allocation3], %s735_s14, %s735_s14, %s736_s15  }
   0x4   :  { %732 = dma.done.wait [#allocation3], 6528  }
   0x5   :  { %733 = vsyncadd [#allocation3], 4294960768  ;;  %v28_v0 = vld [vmem:[#allocation2 + $0x8] sm:$0xff]  ;;  %v27_v1 = vld [vmem:[#allocation2] sm:$0xff]  ;;  %vm86_vm0 = vcmask 130048  }
   0x6   :  { %125 = vmatpush.msra.mxu0 %v28_v0  ;;  %v78_v2 = vld [vmem:[%s1095_s0] sm:$0xff]  ;;  %v79_v3 = vld [vmem:[%s1095_s0 + $0x8] sm:$0xff]  ;;  %v80_v4 = vld [vmem:[%s1095_s0 + $0x10] sm:$0xff] }
   0x7   :  { %v81_v5 = vld [vmem:[%s1095_s0 + $0x18] sm:$0xff]  ;;  %v82_v6 = vld [vmem:[%s1095_s0 + $0x20] sm:$0xff]  ;;  %v83_v7 = vld [vmem:[%s1095_s0 + $0x28] sm:$0xff] }
   0x8   :  { %126 = vmatpush.msra.mxu0 %v27_v1  ;;  %v84_v8 = vld [vmem:[%s1095_s0 + $0x30] sm:$0xff]  ;;  %v85_v9 = vld [vmem:[%s1095_s0 + $0x38] sm:$0xff]  ;;  %v44_v17 = vld [vmem:[#allocation2 + $0x88] sm:$0xff] }
   0x9   :  { %691 = vmatmul.msk.f32.vlgmr.msra.gmra.mxu0 %vm86_vm0, %v78_v2  ;;  %260 = vmatpush.msra.mxu1 %v44_v17  ;;  %v43_v21 = vld [vmem:[#allocation2 + $0x80] sm:$0xff]  ;;  %v42_v26 = vld [vmem:[#allocation2 + $0x78] sm:$0xff]  ;;  %v41_v30 = vld [vmem:[#allocation2 + $0x70] sm:$0xff] }
   0xa   :  { %v40_v34 = vld [vmem:[#allocation2 + $0x68] sm:$0xff]  ;;  %v39_v38 = vld [vmem:[#allocation2 + $0x60] sm:$0xff]  ;;  %v38_v42 = vld [vmem:[#allocation2 + $0x58] sm:$0xff] }
   0xb   :  { %261 = vmatpush.msra.mxu1 %v43_v21  ;;  %v37_v46 = vld [vmem:[#allocation2 + $0x50] sm:$0xff]  ;;  %v36_v49 = vld [vmem:[#allocation2 + $0x48] sm:$0xff]  ;;  %v35_v52 = vld [vmem:[#allocation2 + $0x40] sm:$0xff] }
   0xc   :  { %v34_v55 = vld [vmem:[#allocation2 + $0x38] sm:$0xff]  ;;  %v33_v58 = vld [vmem:[#allocation2 + $0x30] sm:$0xff]  ;;  %v32_v61 = vld [vmem:[#allocation2 + $0x28] sm:$0xff] }
   0xd   :  { %262 = vmatpush.msra.mxu1 %v42_v26  ;;  %v31_v0 = vld [vmem:[#allocation2 + $0x20] sm:$0xff]  ;;  %v30_v1 = vld [vmem:[#allocation2 + $0x18] sm:$0xff] }
   0xf   :  { %263 = vmatpush.msra.mxu1 %v41_v30 }
  0x11   :  { %692 = vmatmul.msk.f32.gmra.mxu0 %vm86_vm0, %v79_v3  ;;  %264 = vmatpush.msra.mxu1 %v40_v34 }
  0x13   :  { %265 = vmatpush.msra.mxu1 %v39_v38 }
  0x15   :  { %266 = vmatpush.msra.mxu1 %v38_v42 }
  0x17   :  { %267 = vmatpush.msra.mxu1 %v37_v46 }
  0x19   :  { %693 = vmatmul.msk.f32.gmra.mxu0 %vm86_vm0, %v80_v4  ;;  %268 = vmatpush.msra.mxu1 %v36_v49  ;;  %v29_v4 = vld [vmem:[#allocation2 + $0x10] sm:$0xff] }
  0x1b   :  { %269 = vmatpush.msra.mxu1 %v35_v52 }
  0x1d   :  { %270 = vmatpush.msra.mxu1 %v34_v55 }
  0x1f   :  { %271 = vmatpush.msra.mxu1 %v33_v58 }
  0x21   :  { %694 = vmatmul.msk.f32.gmra.mxu0 %vm86_vm0, %v81_v5  ;;  %272 = vmatpush.msra.mxu1 %v32_v61 }
  0x23   :  { %273 = vmatpush.msra.mxu1 %v31_v0 }
  0x25   :  { %274 = vmatpush.msra.mxu1 %v30_v1 }
  0x27   :  { %275 = vmatpush.msra.mxu1 %v29_v4 }
  0x29   :  { %695 = vmatmul.msk.f32.gmra.mxu0 %vm86_vm0, %v82_v6 }
  0x31   :  { %696 = vmatmul.msk.f32.gmra.mxu0 %vm86_vm0, %v83_v7 }
  0x39   :  { %697 = vmatmul.msk.f32.gmra.mxu0 %vm86_vm0, %v84_v8 }
  0x41   :  { %698 = vmatmul.msk.f32.gmra.mxu0 %vm86_vm0, %v85_v9 }
  0x86   :  { %v787_v10 = vpop.f32.mrf.mxu0 }
  0x87   :  { %v166_v18 = vmul.f32 %v787_v10, %v787_v10 }
  0x8e   :  { %v789_v11 = vpop.f32.mrf.mxu0 }
  0x8f   :  { %v167_v16 = vmul.f32 %v789_v11, %v789_v11  ;;  %v152_v19 = vadd.f32 %v789_v11, %v787_v10 }
  0x91   :  { %v174_v22 = vadd.f32 %v167_v16, %v166_v18 }
  0x96   :  { %v791_v12 = vpop.f32.mrf.mxu0 }
  0x97   :  { %v168_v20 = vmul.f32 %v791_v12, %v791_v12  ;;  %v153_v23 = vadd.f32 %v152_v19, %v791_v12 }
  0x99   :  { %v175_v27 = vadd.f32 %v174_v22, %v168_v20 }
  0x9e   :  { %v793_v13 = vpop.f32.mrf.mxu0 }
  0x9f   :  { %v169_v24 = vmul.f32 %v793_v13, %v793_v13  ;;  %v154_v28 = vadd.f32 %v153_v23, %v793_v13  ;;  %v837_v23 = vld [vmem:[#allocation2 + $0x190] sm:$0xff] }
  0xa0   :  { %v227_v30 = vperm.slane %v837_v23, 1 }
  0xa1   :  { %v176_v31 = vadd.f32 %v175_v27, %v169_v24  ;;  %v218_v27 = vperm.slane %v837_v23, 0 }
  0xa6   :  { %v795_v14 = vpop.f32.mrf.mxu0 }
  0xa7   :  { %v170_v29 = vmul.f32 %v795_v14, %v795_v14  ;;  %v155_v32 = vadd.f32 %v154_v28, %v795_v14 }
  0xa9   :  { %v177_v35 = vadd.f32 %v176_v31, %v170_v29 }
  0xae   :  { %v797_v15 = vpop.f32.mrf.mxu0 }
  0xaf   :  { %v171_v33 = vmul.f32 %v797_v15, %v797_v15  ;;  %v156_v36 = vadd.f32 %v155_v32, %v797_v15 }
  0xb1   :  { %v178_v39 = vadd.f32 %v177_v35, %v171_v33 }
  0xb6   :  { %v810_v25 = vpop.f32.mrf.mxu0 }
  0xb7   :  { %v172_v37 = vmul.f32 %v810_v25, %v810_v25  ;;  %v157_v40 = vadd.f32 %v156_v36, %v810_v25 }
  0xb9   :  { %v179_v43 = vadd.f32 %v178_v39, %v172_v37 }
  0xbe   :  { %v822_v41 = vpop.f32.mrf.mxu0 }
  0xbf   :  { %v158_v44 = vadd.f32 %v157_v40, %v822_v41  ;;  %v173_v45 = vmul.f32 %v822_v41, %v822_v41 }
  0xc1   :  { %v159_v47 = vrot.slane %v158_v44, 4  ;;  %v180_v48 = vadd.f32 %v179_v43, %v173_v45 }
  0xc3   :  { %v160_v50 = vadd.f32 %v159_v47, %v158_v44  ;;  %v181_v51 = vrot.slane %v180_v48, 4 }
  0xc5   :  { %v161_v53 = vrot.slane %v160_v50, 2  ;;  %v182_v54 = vadd.f32 %v181_v51, %v180_v48 }
  0xc7   :  { %v162_v56 = vadd.f32 %v161_v53, %v160_v50  ;;  %v183_v57 = vrot.slane %v182_v54, 2 }
  0xc9   :  { %v163_v59 = vrot.slane %v162_v56, 1  ;;  %v184_v60 = vadd.f32 %v183_v57, %v182_v54 }
  0xcb   :  { %v164_v62 = vadd.f32 %v163_v59, %v162_v56  ;;  %v185_v63 = vrot.slane %v184_v60, 1 }
  0xcd   :  { %v827_v2 = vmul.f32 0.015625, %v164_v62  ;;  %v186_v3 = vadd.f32 %v185_v63, %v184_v60 }
  0xcf   :  { %v187_v5 = vmul.f32 0.015625, %v186_v3  ;;  %v188_v6 = vmul.f32 %v827_v2, %v827_v2  ;;  %v198_v7 = vsub.f32 %v822_v41, %v827_v2  ;;  %v196_v9 = vsub.f32 %v797_v15, %v827_v2 }
  0xd0   :  { %v197_v16 = vsub.f32 %v810_v25, %v827_v2  ;;  %v191_v15 = vsub.f32 %v787_v10, %v827_v2  ;;  %v192_v25 = vsub.f32 %v789_v11, %v827_v2  ;;  %v193_v36 = vsub.f32 %v791_v12, %v827_v2 }
  0xd1   :  { %v189_v8 = vsub.f32 %v187_v5, %v188_v6  ;;  %v194_v11 = vsub.f32 %v793_v13, %v827_v2  ;;  %v195_v12 = vsub.f32 %v795_v14, %v827_v2 }
  0xd3   :  { %v190_v17 = vmax.f32 %v189_v8, 0.0 }
  0xd5   :  { %v199_v18 = vadd.f32 1e-05, %v190_v17 }
  0xd7   :  { %702 = vrsqrt.f32 %v199_v18  ;;  %vm206_vm2 = vweird.f32 %v199_v18 }
  0xdd   :  { %v703_v19 = vpop.eup %702 }
  0xde   :  { %v201_v20 = vmul.f32 %v703_v19, %v199_v18  ;;  %vm207_vm1 = vweird.f32 %v703_v19 }
  0xdf   :  { %vm208_vm3 = vmor %vm206_vm2, %vm207_vm1 }
  0xe0   :  { %v202_v21 = vmul.f32 %v703_v19, %v201_v20 }
  0xe2   :  { %v203_v22 = vmul.f32 0.5, %v202_v21 }
  0xe4   :  { %v204_v24 = vsub.f32 1.5, %v203_v22 }
  0xe6   :  { %v205_v26 = vmul.f32 %v703_v19, %v204_v24 }
  0xe8   :  { %v209_v28 = vsel %vm208_vm3, %v703_v19, %v205_v26 }
  0xe9   :  { %v210_v29 = vmul.f32 %v209_v28, %v191_v15  ;;  %v211_v31 = vmul.f32 %v209_v28, %v192_v25  ;;  %v212_v39 = vmul.f32 %v209_v28, %v193_v36  ;;  %v213_v44 = vmul.f32 %v209_v28, %v194_v11  ;;  %v60_v25 = vld [vmem:[#allocation2 + $0x108] sm:$0xff] }
  0xea   :  { %v214_v49 = vmul.f32 %v209_v28, %v195_v12  ;;  %v215_v13 = vmul.f32 %v209_v28, %v196_v9  ;;  %v216_v58 = vmul.f32 %v209_v28, %v197_v16  ;;  %v217_v60 = vmul.f32 %v209_v28, %v198_v7  ;;  %409 = vmatpush.msra.mxu2 %v60_v25 }
  0xeb   :  { %v219_v32 = vmul.f32 %v218_v27, %v210_v29  ;;  %v220_v34 = vmul.f32 %v218_v27, %v211_v31  ;;  %v221_v40 = vmul.f32 %v218_v27, %v212_v39  ;;  %v222_v46 = vmul.f32 %v218_v27, %v213_v44  ;;  %v59_v31 = vld [vmem:[#allocation2 + $0x100] sm:$0xff] }
  0xec   :  { %v223_v51 = vmul.f32 %v218_v27, %v214_v49  ;;  %v224_v55 = vmul.f32 %v218_v27, %v215_v13  ;;  %v225_v14 = vmul.f32 %v218_v27, %v216_v58  ;;  %v226_v63 = vmul.f32 %v218_v27, %v217_v60  ;;  %410 = vmatpush.msra.mxu2 %v59_v31  ;;  %v50_v58 = vld [vmem:[#allocation2 + $0xb8] sm:$0xff] }
  0xed   :  { %v228_v33 = vadd.f32 %v227_v30, %v219_v32  ;;  %v229_v38 = vadd.f32 %v227_v30, %v220_v34  ;;  %v230_v43 = vadd.f32 %v227_v30, %v221_v40  ;;  %v231_v48 = vadd.f32 %v227_v30, %v222_v46 }
  0xee   :  { %v232_v53 = vadd.f32 %v227_v30, %v223_v51  ;;  %v233_v57 = vadd.f32 %v227_v30, %v224_v55  ;;  %v234_v62 = vadd.f32 %v227_v30, %v225_v14  ;;  %v235_v3 = vadd.f32 %v227_v30, %v226_v63  ;;  %v51_v55 = vld [vmem:[#allocation2 + $0xc0] sm:$0xff] }
  0xef   :  { %vm236_vm4 = vcmp.gt.f32.partialorder %v228_v33, 0.0  ;;  %v244_v35 = vmul.f32 0.01, %v228_v33  ;;  %v245_v10 = vmul.f32 0.01, %v229_v38  ;;  %vm237_vm5 = vcmp.gt.f32.partialorder %v229_v38, 0.0 }
  0xf0   :  { %v246_v45 = vmul.f32 0.01, %v230_v43  ;;  %vm238_vm6 = vcmp.gt.f32.partialorder %v230_v43, 0.0  ;;  %v247_v50 = vmul.f32 0.01, %v231_v48  ;;  %vm239_vm7 = vcmp.gt.f32.partialorder %v231_v48, 0.0 }
  0xf1   :  { %v252_v37 = vsel %vm236_vm4, %v228_v33, %v244_v35  ;;  %v253_v42 = vsel %vm237_vm5, %v229_v38, %v245_v10  ;;  %v248_v54 = vmul.f32 0.01, %v232_v53  ;;  %vm240_vm8 = vcmp.gt.f32.partialorder %v232_v53, 0.0  ;;  %v58_v35 = vld [vmem:[#allocation2 + $0xf8] sm:$0xff]  ;;  %v57_v38 = vld [vmem:[#allocation2 + $0xf0] sm:$0xff] }
  0xf2   :  { %276 = vmatmul.f32.vlgmr.msra.gmra.mxu1 %v252_v37  ;;  %v254_v47 = vsel %vm238_vm6, %v230_v43, %v246_v45  ;;  %v255_v52 = vsel %vm239_vm7, %v231_v48, %v247_v50  ;;  %v249_v59 = vmul.f32 0.01, %v233_v57  ;;  %vm241_vm9 = vcmp.gt.f32.partialorder %v233_v57, 0.0  ;;  %411 = vmatpush.msra.mxu2 %v58_v35  ;;  %v55_v45 = vld [vmem:[#allocation2 + $0xe0] sm:$0xff]  ;;  %v53_v50 = vld [vmem:[#allocation2 + $0xd0] sm:$0xff] }
  0xf3   :  { %v256_v56 = vsel %vm240_vm8, %v232_v53, %v248_v54  ;;  %v250_v0 = vmul.f32 0.01, %v234_v62  ;;  %vm242_vm10 = vcmp.gt.f32.partialorder %v234_v62, 0.0  ;;  %v251_v4 = vmul.f32 0.01, %v235_v3  ;;  %v52_v53 = vld [vmem:[#allocation2 + $0xc8] sm:$0xff] }
  0xf4   :  { %v257_v61 = vsel %vm241_vm9, %v233_v57, %v249_v59  ;;  %vm243_vm11 = vcmp.gt.f32.partialorder %v235_v3, 0.0  ;;  %412 = vmatpush.msra.mxu2 %v57_v38  ;;  %v49_v59 = vld [vmem:[#allocation2 + $0xb0] sm:$0xff] }
  0xf5   :  { %v258_v1 = vsel %vm242_vm10, %v234_v62, %v250_v0  ;;  %v259_v5 = vsel %vm243_vm11, %v235_v3, %v251_v4  ;;  %v46_v4 = vld [vmem:[#allocation2 + $0x98] sm:$0xff] }
  0xfa   :  { %279 = vmatmul.f32.gmra.mxu1 %v253_v42  ;;  %v56_v42 = vld [vmem:[#allocation2 + $0xe8] sm:$0xff] }
  0xfb   :  { %413 = vmatpush.msra.mxu2 %v56_v42 }
  0xfd   :  { %414 = vmatpush.msra.mxu2 %v55_v45 }
 0x102   :  { %282 = vmatmul.f32.gmra.mxu1 %v254_v47  ;;  %v54_v47 = vld [vmem:[#allocation2 + $0xd8] sm:$0xff] }
 0x103   :  { %415 = vmatpush.msra.mxu2 %v54_v47 }
 0x105   :  { %416 = vmatpush.msra.mxu2 %v53_v50 }
 0x107   :  { %417 = vmatpush.msra.mxu2 %v52_v53 }
 0x109   :  { %418 = vmatpush.msra.mxu2 %v51_v55 }
 0x10a   :  { %285 = vmatmul.f32.gmra.mxu1 %v255_v52 }
 0x10b   :  { %419 = vmatpush.msra.mxu2 %v50_v58 }
 0x10d   :  { %420 = vmatpush.msra.mxu2 %v49_v59 }
 0x112   :  { %288 = vmatmul.f32.gmra.mxu1 %v256_v56 }
 0x11a   :  { %291 = vmatmul.f32.gmra.mxu1 %v257_v61  ;;  %v48_v61 = vld [vmem:[#allocation2 + $0xa8] sm:$0xff] }
 0x11b   :  { %421 = vmatpush.msra.mxu2 %v48_v61 }
 0x122   :  { %294 = vmatmul.f32.gmra.mxu1 %v258_v1  ;;  %v47_v1 = vld [vmem:[#allocation2 + $0xa0] sm:$0xff] }
 0x123   :  { %422 = vmatpush.msra.mxu2 %v47_v1 }
 0x125   :  { %423 = vmatpush.msra.mxu2 %v46_v4 }
 0x12a   :  { %297 = vmatmul.f32.gmra.mxu1 %v259_v5 }
 0x16f   :  { %v854_v6 = vpop.f32.mrf.mxu1 }
 0x170   :  { %v315_v17 = vmul.f32 %v854_v6, %v854_v6 }
 0x177   :  { %v856_v8 = vpop.f32.mrf.mxu1 }
 0x178   :  { %v316_v16 = vmul.f32 %v856_v8, %v856_v8  ;;  %v301_v18 = vadd.f32 %v856_v8, %v854_v6 }
 0x17a   :  { %v323_v20 = vadd.f32 %v316_v16, %v315_v17 }
 0x17f   :  { %v858_v9 = vpop.f32.mrf.mxu1 }
 0x180   :  { %v317_v19 = vmul.f32 %v858_v9, %v858_v9  ;;  %v302_v21 = vadd.f32 %v301_v18, %v858_v9  ;;  %v45_v18 = vld [vmem:[#allocation2 + $0x90] sm:$0xff] }
 0x181   :  { %424 = vmatpush.msra.mxu2 %v45_v18 }
 0x182   :  { %v324_v26 = vadd.f32 %v323_v20, %v317_v19 }
 0x187   :  { %v860_v41 = vpop.f32.mrf.mxu1 }
 0x188   :  { %v318_v22 = vmul.f32 %v860_v41, %v860_v41  ;;  %v303_v27 = vadd.f32 %v302_v21, %v860_v41 }
 0x18a   :  { %v325_v28 = vadd.f32 %v324_v26, %v318_v22 }
 0x18f   :  { %v862_v2 = vpop.f32.mrf.mxu1 }
 0x190   :  { %v319_v15 = vmul.f32 %v862_v2, %v862_v2  ;;  %v304_v29 = vadd.f32 %v303_v27, %v862_v2 }
 0x192   :  { %v326_v32 = vadd.f32 %v325_v28, %v319_v15 }
 0x197   :  { %v864_v7 = vpop.f32.mrf.mxu1 }
 0x198   :  { %v320_v30 = vmul.f32 %v864_v7, %v864_v7  ;;  %v305_v33 = vadd.f32 %v304_v29, %v864_v7 }
 0x19a   :  { %v327_v36 = vadd.f32 %v326_v32, %v320_v30  ;;  %v376_v30 = vperm.slane %v837_v23, 3 }
 0x19f   :  { %v877_v24 = vpop.f32.mrf.mxu1 }
 0x1a0   :  { %v321_v34 = vmul.f32 %v877_v24, %v877_v24  ;;  %v306_v37 = vadd.f32 %v305_v33, %v877_v24 }
 0x1a2   :  { %v328_v10 = vadd.f32 %v327_v36, %v321_v34 }
 0x1a7   :  { %v889_v39 = vpop.f32.mrf.mxu1 }
 0x1a8   :  { %v307_v40 = vadd.f32 %v306_v37, %v889_v39  ;;  %v322_v11 = vmul.f32 %v889_v39, %v889_v39 }
 0x1aa   :  { %v308_v43 = vrot.slane %v307_v40, 4  ;;  %v329_v44 = vadd.f32 %v328_v10, %v322_v11 }
 0x1ac   :  { %v309_v46 = vadd.f32 %v308_v43, %v307_v40  ;;  %v330_v12 = vrot.slane %v329_v44, 4 }
 0x1ae   :  { %v310_v48 = vrot.slane %v309_v46, 2  ;;  %v331_v49 = vadd.f32 %v330_v12, %v329_v44 }
 0x1b0   :  { %v311_v51 = vadd.f32 %v310_v48, %v309_v46  ;;  %v332_v52 = vrot.slane %v331_v49, 2 }
 0x1b2   :  { %v312_v13 = vrot.slane %v311_v51, 1  ;;  %v333_v54 = vadd.f32 %v332_v52, %v331_v49 }
 0x1b4   :  { %v313_v56 = vadd.f32 %v312_v13, %v311_v51  ;;  %v334_v57 = vrot.slane %v333_v54, 1 }
 0x1b6   :  { %v894_v14 = vmul.f32 0.015625, %v313_v56  ;;  %v335_v60 = vadd.f32 %v334_v57, %v333_v54 }
 0x1b8   :  { %v336_v62 = vmul.f32 0.015625, %v335_v60  ;;  %v337_v63 = vmul.f32 %v894_v14, %v894_v14  ;;  %v347_v0 = vsub.f32 %v889_v39, %v894_v14  ;;  %v345_v5 = vsub.f32 %v864_v7, %v894_v14 }
 0x1b9   :  { %v346_v16 = vsub.f32 %v877_v24, %v894_v14  ;;  %v367_v7 = vperm.slane %v837_v23, 2  ;;  %v340_v24 = vsub.f32 %v854_v6, %v894_v14  ;;  %v341_v25 = vsub.f32 %v856_v8, %v894_v14 }
 0x1ba   :  { %v338_v3 = vsub.f32 %v336_v62, %v337_v63  ;;  %v342_v36 = vsub.f32 %v858_v9, %v894_v14  ;;  %v343_v8 = vsub.f32 %v860_v41, %v894_v14  ;;  %v344_v9 = vsub.f32 %v862_v2, %v894_v14 }
 0x1bc   :  { %v339_v17 = vmax.f32 %v338_v3, 0.0 }
 0x1be   :  { %v348_v19 = vadd.f32 1e-05, %v339_v17 }
 0x1c0   :  { %704 = vrsqrt.f32 %v348_v19  ;;  %vm355_vm13 = vweird.f32 %v348_v19 }
 0x1c6   :  { %v705_v20 = vpop.eup %704 }
 0x1c7   :  { %v350_v21 = vmul.f32 %v705_v20, %v348_v19  ;;  %vm356_vm12 = vweird.f32 %v705_v20 }
 0x1c8   :  { %vm357_vm14 = vmor %vm355_vm13, %vm356_vm12 }
 0x1c9   :  { %v351_v22 = vmul.f32 %v705_v20, %v350_v21 }
 0x1cb   :  { %v352_v26 = vmul.f32 0.5, %v351_v22 }
 0x1cd   :  { %v353_v27 = vsub.f32 1.5, %v352_v26 }
 0x1cf   :  { %v354_v15 = vmul.f32 %v705_v20, %v353_v27 }
 0x1d1   :  { %v358_v28 = vsel %vm357_vm14, %v705_v20, %v354_v15 }
 0x1d2   :  { %v359_v29 = vmul.f32 %v358_v28, %v340_v24  ;;  %v360_v31 = vmul.f32 %v358_v28, %v341_v25  ;;  %v361_v10 = vmul.f32 %v358_v28, %v342_v36  ;;  %v362_v43 = vmul.f32 %v358_v28, %v343_v8  ;;  %v76_v25 = vld [vmem:[#allocation2 + $0x188] sm:$0xff] }
 0x1d3   :  { %v363_v47 = vmul.f32 %v358_v28, %v344_v9  ;;  %v364_v41 = vmul.f32 %v358_v28, %v345_v5  ;;  %v365_v55 = vmul.f32 %v358_v28, %v346_v16  ;;  %v366_v57 = vmul.f32 %v358_v28, %v347_v0  ;;  %559 = vmatpush.msra.mxu3 %v76_v25 }
 0x1d4   :  { %v368_v32 = vmul.f32 %v367_v7, %v359_v29  ;;  %v369_v34 = vmul.f32 %v367_v7, %v360_v31  ;;  %v370_v40 = vmul.f32 %v367_v7, %v361_v10  ;;  %v371_v45 = vmul.f32 %v367_v7, %v362_v43  ;;  %v75_v31 = vld [vmem:[#allocation2 + $0x180] sm:$0xff] }
 0x1d5   :  { %v372_v49 = vmul.f32 %v367_v7, %v363_v47  ;;  %v373_v53 = vmul.f32 %v367_v7, %v364_v41  ;;  %v374_v2 = vmul.f32 %v367_v7, %v365_v55  ;;  %v375_v60 = vmul.f32 %v367_v7, %v366_v57  ;;  %560 = vmatpush.msra.mxu3 %v75_v31  ;;  %v66_v55 = vld [vmem:[#allocation2 + $0x138] sm:$0xff] }
 0x1d6   :  { %v377_v33 = vadd.f32 %v376_v30, %v368_v32  ;;  %v378_v38 = vadd.f32 %v376_v30, %v369_v34  ;;  %v379_v42 = vadd.f32 %v376_v30, %v370_v40  ;;  %v380_v12 = vadd.f32 %v376_v30, %v371_v45 }
 0x1d7   :  { %v381_v51 = vadd.f32 %v376_v30, %v372_v49  ;;  %v382_v54 = vadd.f32 %v376_v30, %v373_v53  ;;  %v383_v59 = vadd.f32 %v376_v30, %v374_v2  ;;  %v384_v63 = vadd.f32 %v376_v30, %v375_v60  ;;  %v67_v53 = vld [vmem:[#allocation2 + $0x140] sm:$0xff] }
 0x1d8   :  { %vm385_vm15 = vcmp.gt.f32.partialorder %v377_v33, 0.0  ;;  %v393_v35 = vmul.f32 0.01, %v377_v33  ;;  %v394_v6 = vmul.f32 0.01, %v378_v38  ;;  %vm386_vm0 = vcmp.gt.f32.partialorder %v378_v38, 0.0 }
 0x1d9   :  { %v395_v44 = vmul.f32 0.01, %v379_v42  ;;  %vm387_vm1 = vcmp.gt.f32.partialorder %v379_v42, 0.0  ;;  %v396_v48 = vmul.f32 0.01, %v380_v12  ;;  %vm388_vm2 = vcmp.gt.f32.partialorder %v380_v12, 0.0 }
 0x1da   :  { %v401_v37 = vsel %vm385_vm15, %v377_v33, %v393_v35  ;;  %v402_v11 = vsel %vm386_vm0, %v378_v38, %v394_v6  ;;  %v397_v52 = vmul.f32 0.01, %v381_v51  ;;  %vm389_vm3 = vcmp.gt.f32.partialorder %v381_v51, 0.0  ;;  %v74_v35 = vld [vmem:[#allocation2 + $0x178] sm:$0xff]  ;;  %v73_v38 = vld [vmem:[#allocation2 + $0x170] sm:$0xff] }
 0x1db   :  { %425 = vmatmul.f32.vlgmr.msra.gmra.mxu2 %v401_v37  ;;  %v403_v46 = vsel %vm387_vm1, %v379_v42, %v395_v44  ;;  %v404_v50 = vsel %vm388_vm2, %v380_v12, %v396_v48  ;;  %v398_v56 = vmul.f32 0.01, %v382_v54  ;;  %vm390_vm4 = vcmp.gt.f32.partialorder %v382_v54, 0.0  ;;  %561 = vmatpush.msra.mxu3 %v74_v35  ;;  %v71_v44 = vld [vmem:[#allocation2 + $0x160] sm:$0xff]  ;;  %v69_v48 = vld [vmem:[#allocation2 + $0x150] sm:$0xff] }
 0x1dc   :  { %v405_v13 = vsel %vm389_vm3, %v381_v51, %v397_v52  ;;  %v399_v61 = vmul.f32 0.01, %v383_v59  ;;  %vm391_vm5 = vcmp.gt.f32.partialorder %v383_v59, 0.0  ;;  %v400_v1 = vmul.f32 0.01, %v384_v63  ;;  %v68_v51 = vld [vmem:[#allocation2 + $0x148] sm:$0xff] }
 0x1dd   :  { %v406_v58 = vsel %vm390_vm4, %v382_v54, %v398_v56  ;;  %vm392_vm6 = vcmp.gt.f32.partialorder %v384_v63, 0.0  ;;  %562 = vmatpush.msra.mxu3 %v73_v38  ;;  %v65_v56 = vld [vmem:[#allocation2 + $0x130] sm:$0xff] }
 0x1de   :  { %v407_v62 = vsel %vm391_vm5, %v383_v59, %v399_v61  ;;  %v408_v3 = vsel %vm392_vm6, %v384_v63, %v400_v1  ;;  %v62_v1 = vld [vmem:[#allocation2 + $0x118] sm:$0xff] }
 0x1e3   :  { %428 = vmatmul.f32.gmra.mxu2 %v402_v11  ;;  %v72_v11 = vld [vmem:[#allocation2 + $0x168] sm:$0xff] }
 0x1e4   :  { %563 = vmatpush.msra.mxu3 %v72_v11 }
 0x1e6   :  { %564 = vmatpush.msra.mxu3 %v71_v44 }
 0x1eb   :  { %431 = vmatmul.f32.gmra.mxu2 %v403_v46  ;;  %v70_v46 = vld [vmem:[#allocation2 + $0x158] sm:$0xff] }
 0x1ec   :  { %565 = vmatpush.msra.mxu3 %v70_v46 }
 0x1ee   :  { %566 = vmatpush.msra.mxu3 %v69_v48 }
 0x1f0   :  { %567 = vmatpush.msra.mxu3 %v68_v51 }
 0x1f2   :  { %568 = vmatpush.msra.mxu3 %v67_v53 }
 0x1f3   :  { %434 = vmatmul.f32.gmra.mxu2 %v404_v50 }
 0x1f4   :  { %569 = vmatpush.msra.mxu3 %v66_v55 }
 0x1f6   :  { %570 = vmatpush.msra.mxu3 %v65_v56 }
 0x1fb   :  { %437 = vmatmul.f32.gmra.mxu2 %v405_v13 }
 0x203   :  { %440 = vmatmul.f32.gmra.mxu2 %v406_v58  ;;  %v64_v58 = vld [vmem:[#allocation2 + $0x128] sm:$0xff] }
 0x204   :  { %571 = vmatpush.msra.mxu3 %v64_v58 }
 0x20b   :  { %443 = vmatmul.f32.gmra.mxu2 %v407_v62  ;;  %v63_v62 = vld [vmem:[#allocation2 + $0x120] sm:$0xff] }
 0x20c   :  { %572 = vmatpush.msra.mxu3 %v63_v62 }
 0x20e   :  { %573 = vmatpush.msra.mxu3 %v62_v1  ;;  %v600_v1 = vlaneseq }
 0x213   :  { %446 = vmatmul.f32.gmra.mxu2 %v408_v3 }
 0x25e   :  { %v919_v4 = vpop.f32.mrf.mxu2 }
 0x25f   :  { %v464_v18 = vmul.f32 %v919_v4, %v919_v4 }
 0x266   :  { %v921_v5 = vpop.f32.mrf.mxu2 }
 0x267   :  { %v465_v17 = vmul.f32 %v921_v5, %v921_v5  ;;  %v450_v19 = vadd.f32 %v921_v5, %v919_v4 }
 0x269   :  { %v472_v21 = vadd.f32 %v465_v17, %v464_v18 }
 0x26e   :  { %v923_v16 = vpop.f32.mrf.mxu2 }
 0x26f   :  { %v466_v20 = vmul.f32 %v923_v16, %v923_v16  ;;  %v451_v22 = vadd.f32 %v450_v19, %v923_v16  ;;  %v61_v19 = vld [vmem:[#allocation2 + $0x110] sm:$0xff] }
 0x270   :  { %574 = vmatpush.msra.mxu3 %v61_v19 }
 0x271   :  { %v473_v15 = vadd.f32 %v472_v21, %v466_v20 }
 0x276   :  { %v925_v39 = vpop.f32.mrf.mxu2 }
 0x277   :  { %v467_v26 = vmul.f32 %v925_v39, %v925_v39  ;;  %v452_v7 = vadd.f32 %v451_v22, %v925_v39 }
 0x279   :  { %v474_v28 = vadd.f32 %v473_v15, %v467_v26 }
 0x27e   :  { %v927_v14 = vpop.f32.mrf.mxu2 }
 0x27f   :  { %v468_v24 = vmul.f32 %v927_v14, %v927_v14  ;;  %v453_v29 = vadd.f32 %v452_v7, %v927_v14 }
 0x281   :  { %v475_v32 = vadd.f32 %v474_v28, %v468_v24 }
 0x286   :  { %v929_v0 = vpop.f32.mrf.mxu2 }
 0x287   :  { %v469_v30 = vmul.f32 %v929_v0, %v929_v0  ;;  %v454_v33 = vadd.f32 %v453_v29, %v929_v0 }
 0x289   :  { %v476_v36 = vadd.f32 %v475_v32, %v469_v30  ;;  %v525_v30 = vperm.slane %v837_v23, 5 }
 0x28e   :  { %v942_v27 = vpop.f32.mrf.mxu2 }
 0x28f   :  { %v470_v34 = vmul.f32 %v942_v27, %v942_v27  ;;  %v455_v37 = vadd.f32 %v454_v33, %v942_v27 }
 0x291   :  { %v477_v6 = vadd.f32 %v476_v36, %v470_v34 }
 0x296   :  { %v954_v10 = vpop.f32.mrf.mxu2 }
 0x297   :  { %v456_v40 = vadd.f32 %v455_v37, %v954_v10  ;;  %v471_v8 = vmul.f32 %v954_v10, %v954_v10 }
 0x299   :  { %v457_v42 = vrot.slane %v456_v40, 4  ;;  %v478_v43 = vadd.f32 %v477_v6, %v471_v8 }
 0x29b   :  { %v458_v45 = vadd.f32 %v457_v42, %v456_v40  ;;  %v479_v9 = vrot.slane %v478_v43, 4 }
 0x29d   :  { %v459_v12 = vrot.slane %v458_v45, 2  ;;  %v480_v47 = vadd.f32 %v479_v9, %v478_v43 }
 0x29f   :  { %v460_v49 = vadd.f32 %v459_v12, %v458_v45  ;;  %v481_v50 = vrot.slane %v480_v47, 2 }
 0x2a1   :  { %v461_v41 = vrot.slane %v460_v49, 1  ;;  %v482_v52 = vadd.f32 %v481_v50, %v480_v47 }
 0x2a3   :  { %v462_v13 = vadd.f32 %v461_v41, %v460_v49  ;;  %v483_v54 = vrot.slane %v482_v52, 1 }
 0x2a5   :  { %v959_v2 = vmul.f32 0.015625, %v462_v13  ;;  %v484_v57 = vadd.f32 %v483_v54, %v482_v52 }
 0x2a7   :  { %v485_v59 = vmul.f32 0.015625, %v484_v57  ;;  %v486_v60 = vmul.f32 %v959_v2, %v959_v2  ;;  %v496_v61 = vsub.f32 %v954_v10, %v959_v2  ;;  %v494_v3 = vsub.f32 %v929_v0, %v959_v2 }
 0x2a8   :  { %v495_v17 = vsub.f32 %v942_v27, %v959_v2  ;;  %v516_v0 = vperm.slane %v837_v23, 4  ;;  %v489_v27 = vsub.f32 %v919_v4, %v959_v2  ;;  %v490_v25 = vsub.f32 %v921_v5, %v959_v2 }
 0x2a9   :  { %v487_v63 = vsub.f32 %v485_v59, %v486_v60  ;;  %v491_v36 = vsub.f32 %v923_v16, %v959_v2  ;;  %v492_v5 = vsub.f32 %v925_v39, %v959_v2  ;;  %v493_v16 = vsub.f32 %v927_v14, %v959_v2 }
 0x2ab   :  { %v488_v18 = vmax.f32 %v487_v63, 0.0 }
 0x2ad   :  { %v497_v20 = vadd.f32 1e-05, %v488_v18 }
 0x2af   :  { %706 = vrsqrt.f32 %v497_v20  ;;  %vm504_vm8 = vweird.f32 %v497_v20 }
 0x2b5   :  { %v707_v21 = vpop.eup %706 }
 0x2b6   :  { %v499_v22 = vmul.f32 %v707_v21, %v497_v20  ;;  %vm505_vm7 = vweird.f32 %v707_v21 }
 0x2b7   :  { %vm506_vm9 = vmor %vm504_vm8, %vm505_vm7 }
 0x2b8   :  { %v500_v26 = vmul.f32 %v707_v21, %v499_v22 }
 0x2ba   :  { %v501_v15 = vmul.f32 0.5, %v500_v26 }
 0x2bc   :  { %v502_v7 = vsub.f32 1.5, %v501_v15 }
 0x2be   :  { %v503_v24 = vmul.f32 %v707_v21, %v502_v7 }
 0x2c0   :  { %v507_v28 = vsel %vm506_vm9, %v707_v21, %v503_v24 }
 0x2c1   :  { %v508_v29 = vmul.f32 %v507_v28, %v489_v27  ;;  %v509_v31 = vmul.f32 %v507_v28, %v490_v25  ;;  %v510_v6 = vmul.f32 %v507_v28, %v491_v36  ;;  %v511_v42 = vmul.f32 %v507_v28, %v492_v5 }
 0x2c2   :  { %v512_v46 = vmul.f32 %v507_v28, %v493_v16  ;;  %v513_v39 = vmul.f32 %v507_v28, %v494_v3  ;;  %v514_v53 = vmul.f32 %v507_v28, %v495_v17  ;;  %v515_v54 = vmul.f32 %v507_v28, %v496_v61 }
 0x2c3   :  { %v517_v32 = vmul.f32 %v516_v0, %v508_v29  ;;  %v518_v34 = vmul.f32 %v516_v0, %v509_v31  ;;  %v519_v40 = vmul.f32 %v516_v0, %v510_v6  ;;  %v520_v44 = vmul.f32 %v516_v0, %v511_v42 }
 0x2c4   :  { %v521_v47 = vmul.f32 %v516_v0, %v512_v46  ;;  %v522_v51 = vmul.f32 %v516_v0, %v513_v39  ;;  %v523_v14 = vmul.f32 %v516_v0, %v514_v53  ;;  %v524_v57 = vmul.f32 %v516_v0, %v515_v54 }
 0x2c5   :  { %v526_v33 = vadd.f32 %v525_v30, %v517_v32  ;;  %v527_v38 = vadd.f32 %v525_v30, %v518_v34  ;;  %v528_v11 = vadd.f32 %v525_v30, %v519_v40  ;;  %v529_v9 = vadd.f32 %v525_v30, %v520_v44 }
 0x2c6   :  { %v530_v49 = vadd.f32 %v525_v30, %v521_v47  ;;  %v531_v52 = vadd.f32 %v525_v30, %v522_v51  ;;  %v532_v56 = vadd.f32 %v525_v30, %v523_v14  ;;  %v533_v60 = vadd.f32 %v525_v30, %v524_v57 }
 0x2c7   :  { %vm534_vm10 = vcmp.gt.f32.partialorder %v526_v33, 0.0  ;;  %v542_v35 = vmul.f32 0.01, %v526_v33  ;;  %v543_v4 = vmul.f32 0.01, %v527_v38  ;;  %vm535_vm11 = vcmp.gt.f32.partialorder %v527_v38, 0.0 }
 0x2c8   :  { %v544_v43 = vmul.f32 0.01, %v528_v11  ;;  %vm536_vm12 = vcmp.gt.f32.partialorder %v528_v11, 0.0  ;;  %v545_v12 = vmul.f32 0.01, %v529_v9  ;;  %vm537_vm13 = vcmp.gt.f32.partialorder %v529_v9, 0.0 }
 0x2c9   :  { %v550_v37 = vsel %vm534_vm10, %v526_v33, %v542_v35  ;;  %v551_v8 = vsel %vm535_vm11, %v527_v38, %v543_v4  ;;  %v546_v50 = vmul.f32 0.01, %v530_v49  ;;  %vm538_vm14 = vcmp.gt.f32.partialorder %v530_v49, 0.0 }
 0x2ca   :  { %575 = vmatmul.f32.vlgmr.msra.gmra.mxu3 %v550_v37  ;;  %v552_v45 = vsel %vm536_vm12, %v528_v11, %v544_v43  ;;  %v553_v48 = vsel %vm537_vm13, %v529_v9, %v545_v12  ;;  %v547_v13 = vmul.f32 0.01, %v531_v52  ;;  %vm539_vm15 = vcmp.gt.f32.partialorder %v531_v52, 0.0 }
 0x2cb   :  { %v554_v41 = vsel %vm538_vm14, %v530_v49, %v546_v50  ;;  %v548_v58 = vmul.f32 0.01, %v532_v56  ;;  %vm540_vm0 = vcmp.gt.f32.partialorder %v532_v56, 0.0  ;;  %v549_v62 = vmul.f32 0.01, %v533_v60 }
 0x2cc   :  { %v555_v55 = vsel %vm539_vm15, %v531_v52, %v547_v13  ;;  %vm541_vm1 = vcmp.gt.f32.partialorder %v533_v60, 0.0  ;;  %v984_v3 = vand.u32 127, %v600_v1  ;;  %v558_v17 = vperm.slane %v837_v23, 6 }
 0x2cd   :  { %v556_v59 = vsel %vm540_vm0, %v532_v56, %v548_v58  ;;  %v557_v63 = vsel %vm541_vm1, %v533_v60, %v549_v62 }
 0x2ce   :  { %vm602_vm2 = vcmp.lt.s32.totalorder %v984_v3, 8  ;;  %v627_v36 = vcvt.s32.f32 %v984_v3  ;;  %vm660_vm11 = vcmp.eq.s32.totalorder %v984_v3, 8  ;;  %vm669_vm12 = vcmp.eq.s32.totalorder %v984_v3, 9 }
 0x2d2   :  { %578 = vmatmul.f32.gmra.mxu3 %v551_v8 }
 0x2da   :  { %581 = vmatmul.f32.gmra.mxu3 %v552_v45 }
 0x2e2   :  { %584 = vmatmul.f32.gmra.mxu3 %v553_v48 }
 0x2ea   :  { %587 = vmatmul.f32.gmra.mxu3 %v554_v41 }
 0x2f2   :  { %590 = vmatmul.f32.gmra.mxu3 %v555_v55 }
 0x2fa   :  { %593 = vmatmul.f32.gmra.mxu3 %v556_v59 }
 0x302   :  { %596 = vmatmul.f32.gmra.mxu3 %v557_v63 }
 0x34d   :  { %v576_v10 = vpop.f32.mrf.mxu3 }
 0x34e   :  { %v988_v2 = vadd.f32 %v576_v10, %v558_v17 }
 0x350   :  { %v603_v61 = vsel %vm602_vm2, %v988_v2, -inf }
 0x351   :  { %611 = vmax.xlane.f32.xlu0 %v603_v61 }
 0x355   :  { %v579_v18 = vpop.f32.mrf.mxu3 }
 0x356   :  { %v993_v19 = vadd.f32 %v579_v18, %v558_v17 }
 0x358   :  { %v604_v20 = vsel %vm602_vm2, %v993_v19, -inf }
 0x359   :  { %613 = vmax.xlane.f32.xlu0 %v604_v20 }
 0x35d   :  { %v582_v21 = vpop.f32.mrf.mxu3 }
 0x35e   :  { %v998_v23 = vadd.f32 %v582_v21, %v558_v17 }
 0x360   :  { %v605_v22 = vsel %vm602_vm2, %v998_v23, -inf }
 0x361   :  { %615 = vmax.xlane.f32.xlu1 %v605_v22 }
 0x365   :  { %v585_v26 = vpop.f32.mrf.mxu3 }
 0x366   :  { %v1003_v15 = vadd.f32 %v585_v26, %v558_v17 }
 0x368   :  { %v606_v7 = vsel %vm602_vm2, %v1003_v15, -inf }
 0x369   :  { %617 = vmax.xlane.f32.xlu1 %v606_v7 }
 0x36d   :  { %v588_v24 = vpop.f32.mrf.mxu3 }
 0x36e   :  { %v1008_v0 = vadd.f32 %v588_v24, %v558_v17 }
 0x370   :  { %v607_v27 = vsel %vm602_vm2, %v1008_v0, -inf }
 0x371   :  { %619 = vmax.xlane.f32.xlu2 %v607_v27 }
 0x375   :  { %v591_v25 = vpop.f32.mrf.mxu3 }
 0x376   :  { %v1013_v28 = vadd.f32 %v591_v25, %v558_v17 }
 0x378   :  { %v608_v29 = vsel %vm602_vm2, %v1013_v28, -inf }
 0x379   :  { %621 = vmax.xlane.f32.xlu2 %v608_v29 }
 0x37d   :  { %v594_v30 = vpop.f32.mrf.mxu3 }
 0x37e   :  { %v1018_v31 = vadd.f32 %v594_v30, %v558_v17 }
 0x380   :  { %v609_v32 = vsel %vm602_vm2, %v1018_v31, -inf }
 0x381   :  { %623 = vmax.xlane.f32.xlu0 %v609_v32 }
 0x385   :  { %v597_v33 = vpop.f32.mrf.mxu3 }
 0x386   :  { %v1023_v34 = vadd.f32 %v597_v33, %v558_v17 }
 0x388   :  { %v610_v35 = vsel %vm602_vm2, %v1023_v34, -inf }
 0x389   :  { %625 = vmax.xlane.f32.xlu1 %v610_v35 }
 0x3c4   :  { %v612_v37 = vpop.xlane.xlu0 %611 }
 0x3c5   :  { %vm628_vm3 = vcmp.eq.f32.partialorder %v603_v61, %v612_v37  ;;  %v661_v47 = vsel %vm660_vm11, %v612_v37, %v988_v2 }
 0x3c6   :  { %v636_v38 = vsel %vm628_vm3, %v627_v36, 128.0 }
 0x3c7   :  { %644 = vmin.xlane.f32.xlu2 %v636_v38 }
 0x3cc   :  { %v614_v6 = vpop.xlane.xlu0 %613 }
 0x3cd   :  { %vm629_vm4 = vcmp.eq.f32.partialorder %v604_v20, %v614_v6  ;;  %v662_v39 = vsel %vm660_vm11, %v614_v6, %v993_v19 }
 0x3ce   :  { %v637_v4 = vsel %vm629_vm4, %v627_v36, 128.0 }
 0x3cf   :  { %646 = vmin.xlane.f32.xlu0 %v637_v4 }
 0x3d4   :  { %v616_v40 = vpop.xlane.xlu1 %615 }
 0x3d5   :  { %vm630_vm5 = vcmp.eq.f32.partialorder %v605_v22, %v616_v40  ;;  %v663_v41 = vsel %vm660_vm11, %v616_v40, %v998_v23 }
 0x3d6   :  { %v638_v5 = vsel %vm630_vm5, %v627_v36, 128.0 }
 0x3d7   :  { %648 = vmin.xlane.f32.xlu1 %v638_v5 }
 0x3dc   :  { %v618_v8 = vpop.xlane.xlu1 %617 }
 0x3dd   :  { %vm631_vm6 = vcmp.eq.f32.partialorder %v606_v7, %v618_v8  ;;  %v664_v13 = vsel %vm660_vm11, %v618_v8, %v1003_v15 }
 0x3de   :  { %v639_v11 = vsel %vm631_vm6, %v627_v36, 128.0 }
 0x3df   :  { %650 = vmin.xlane.f32.xlu2 %v639_v11 }
 0x3e4   :  { %v620_v42 = vpop.xlane.xlu2 %619 }
 0x3e5   :  { %vm632_vm7 = vcmp.eq.f32.partialorder %v607_v27, %v620_v42  ;;  %v665_v55 = vsel %vm660_vm11, %v620_v42, %v1008_v0 }
 0x3e6   :  { %v640_v43 = vsel %vm632_vm7, %v627_v36, 128.0 }
 0x3e7   :  { %652 = vmin.xlane.f32.xlu0 %v640_v43 }
 0x3ec   :  { %v622_v44 = vpop.xlane.xlu2 %621 }
 0x3ed   :  { %vm633_vm8 = vcmp.eq.f32.partialorder %v608_v29, %v622_v44  ;;  %v666_v58 = vsel %vm660_vm11, %v622_v44, %v1013_v28 }
 0x3ee   :  { %v641_v16 = vsel %vm633_vm8, %v627_v36, 128.0 }
 0x3ef   :  { %654 = vmin.xlane.f32.xlu1 %v641_v16 }
 0x3f4   :  { %v624_v45 = vpop.xlane.xlu0 %623 }
 0x3f5   :  { %vm634_vm9 = vcmp.eq.f32.partialorder %v609_v32, %v624_v45  ;;  %v667_v62 = vsel %vm660_vm11, %v624_v45, %v1018_v31 }
 0x3f6   :  { %v642_v9 = vsel %vm634_vm9, %v627_v36, 128.0 }
 0x3f7   :  { %656 = vmin.xlane.f32.xlu2 %v642_v9 }
 0x3fc   :  { %v626_v46 = vpop.xlane.xlu1 %625 }
 0x3fd   :  { %vm635_vm10 = vcmp.eq.f32.partialorder %v610_v35, %v626_v46  ;;  %v668_v17 = vsel %vm660_vm11, %v626_v46, %v1023_v34 }
 0x3fe   :  { %v643_v12 = vsel %vm635_vm10, %v627_v36, 128.0 }
 0x3ff   :  { %658 = vmin.xlane.f32.xlu0 %v643_v12 }
 0x43a   :  { %v645_v48 = vpop.xlane.xlu2 %644 }
 0x43b   :  { %v670_v49 = vsel %vm669_vm12, %v645_v48, %v661_v47 }
 0x43c   :  { %678 = vst [vmem:[%s1097_s2] sm:$0xff] %v670_v49 }
 0x442   :  { %v647_v50 = vpop.xlane.xlu0 %646 }
 0x443   :  { %v671_v51 = vsel %vm669_vm12, %v647_v50, %v662_v39 }
 0x444   :  { %679 = vst [vmem:[%s1097_s2 + $0x8] sm:$0xff] %v671_v51 }
 0x44a   :  { %v649_v52 = vpop.xlane.xlu1 %648 }
 0x44b   :  { %v672_v53 = vsel %vm669_vm12, %v649_v52, %v663_v41 }
 0x44c   :  { %680 = vst [vmem:[%s1097_s2 + $0x10] sm:$0xff] %v672_v53 }
 0x452   :  { %v651_v14 = vpop.xlane.xlu2 %650 }
 0x453   :  { %v673_v54 = vsel %vm669_vm12, %v651_v14, %v664_v13 }
 0x454   :  { %681 = vst [vmem:[%s1097_s2 + $0x18] sm:$0xff] %v673_v54 }
 0x45a   :  { %v653_v56 = vpop.xlane.xlu0 %652 }
 0x45b   :  { %v674_v57 = vsel %vm669_vm12, %v653_v56, %v665_v55 }
 0x45c   :  { %682 = vst [vmem:[%s1097_s2 + $0x20] sm:$0xff] %v674_v57 }
 0x462   :  { %v655_v59 = vpop.xlane.xlu1 %654 }
 0x463   :  { %v675_v60 = vsel %vm669_vm12, %v655_v59, %v666_v58 }
 0x464   :  { %683 = vst [vmem:[%s1097_s2 + $0x28] sm:$0xff] %v675_v60 }
 0x46a   :  { %v657_v63 = vpop.xlane.xlu2 %656 }
 0x46b   :  { %v676_v1 = vsel %vm669_vm12, %v657_v63, %v667_v62 }
 0x46c   :  { %684 = vst [vmem:[%s1097_s2 + $0x30] sm:$0xff] %v676_v1 }
 0x472   :  { %v659_v10 = vpop.xlane.xlu0 %658 }
 0x473   :  { %v677_v2 = vsel %vm669_vm12, %v659_v10, %v668_v17 }
 0x474   :  { %685 = vst [vmem:[%s1097_s2 + $0x38] sm:$0xff] %v677_v2 }
 0x475   :  { %690 = vsyncpa [#allocation3], 1 }

</bundles_post_ra>
